<compile_context>
chip_gen: v7x
topology: tpu7x:2x2x1
jax: 0.10.0
libtpu: 0.0.40
codegen_flags: <defaults>
</compile_context>

<pallas_src>
import jax
import jax.numpy as jnp
from jax.experimental import pallas as pl
from jax.experimental.pallas import tpu as pltpu

IN_F = 96
HID_F = 40
OUT_F = 2


def _round_up(x, m):
    return ((x + m - 1) // m) * m


def mlp_kernel(x_ref, w1_ref, b1_ref, w2_ref, b2_ref, o_ref):
    # Cast in-kernel (mirrors x.float()); VPU work, hidden under the x DMA.
    x = x_ref[...].astype(jnp.float32)
    # Hidden layer: (TB, 96) @ (96, 40) + (1, 40) -> ReLU  (f32 accumulation)
    h = jnp.dot(x, w1_ref[...], preferred_element_type=jnp.float32)
    h = jnp.maximum(h + b1_ref[...], 0.0)
    # Output layer: (TB, 40) @ (40, 2) + (1, 2)
    o = jnp.dot(h, w2_ref[...], preferred_element_type=jnp.float32)
    o_ref[...] = (o + b2_ref[...]).astype(o_ref.dtype)


def net_forward(x, w1, b1, w2, b2, *, tile_b=2048):
    """x: (B, 96) any float/int dtype -> (B, 2) float32.

    Batch-tiled, bandwidth-bound fused MLP. Weights stay resident in VMEM; the
    batch grid axis is 'parallel' so v7x can shard it across both TensorCores.
    """
    B, F = x.shape
    assert F == IN_F, f"expected {IN_F} input features, got {F}"

    # Tile the batch: multiple of 8 (sublane granularity), capped so tiny
    # batches don't request a block far larger than the array.
    TB = min(tile_b, _round_up(B, 8))
    grid = (pl.cdiv(B, TB),)

    # Advisory cost hint for XLA's scheduler (2 matmuls + bias/ReLU per row).
    flops = 2 * B * (IN_F * HID_F + HID_F * OUT_F)
    bytes_accessed = (
        B * IN_F * x.dtype.itemsize          # stream x
        + B * OUT_F * 4                      # write out
        + (IN_F * HID_F + HID_F + HID_F * OUT_F + OUT_F) * 4  # params (once)
    )

    return pl.pallas_call(
        mlp_kernel,
        out_shape=jax.ShapeDtypeStruct((B, OUT_F), jnp.float32),
        grid_spec=pl.GridSpec(
            grid=grid,
            in_specs=[
                # x streams tile-by-tile (double-buffered by Pallas).
                pl.BlockSpec((TB, IN_F), lambda i: (i, 0)),
                # Weights / biases: constant block index -> resident in VMEM.
                pl.BlockSpec((IN_F, HID_F), lambda i: (0, 0)),
                pl.BlockSpec((1, HID_F), lambda i: (0, 0)),
                pl.BlockSpec((HID_F, OUT_F), lambda i: (0, 0)),
                pl.BlockSpec((1, OUT_F), lambda i: (0, 0)),
            ],
            out_specs=pl.BlockSpec((TB, OUT_F), lambda i: (i, 0)),
        ),
        compiler_params=pltpu.CompilerParams(
            # Independent batch tiles: allow megacore sharding on v7x.
            dimension_semantics=("parallel",),
        ),
        cost_estimate=pl.CostEstimate(
            flops=flops, transcendentals=0, bytes_accessed=bytes_accessed
        ),
    )(x, w1, b1, w2, b2)


def init_params(key):
    """Deterministic init mimicking nn.Linear's U(-1/sqrt(fan_in), +1/sqrt(fan_in))."""
    k1, k2, k3, k4 = jax.random.split(key, 4)
    bound1 = 1.0 / jnp.sqrt(float(IN_F))
    bound2 = 1.0 / jnp.sqrt(float(HID_F))
    # Stored as (in_features, out_features) = PyTorch weight transposed.
    w1 = jax.random.uniform(k1, (IN_F, HID_F), jnp.float32, -bound1, bound1)
    b1 = jax.random.uniform(k2, (1, HID_F), jnp.float32, -bound1, bound1)
    w2 = jax.random.uniform(k3, (HID_F, OUT_F), jnp.float32, -bound2, bound2)
    b2 = jax.random.uniform(k4, (1, OUT_F), jnp.float32, -bound2, bound2)
    return w1, b1, w2, b2


if __name__ == "__main__":
    key = jax.random.PRNGKey(0)
    k_x, k_p = jax.random.split(key)

    # Small batch for the functional check. (For real workloads, batch many
    # rows per call — at tiny B the pallas_call dispatch overhead dominates.)
    B = 16
    x = jax.random.normal(k_x, (B, IN_F), dtype=jnp.float32)
    w1, b1, w2, b2 = init_params(k_p)

    out = net_forward(x, w1, b1, w2, b2)
    out = jax.block_until_ready(out)

    # Reference check in plain JAX (same math as the PyTorch module).
    ref = jnp.maximum(x.astype(jnp.float32) @ w1 + b1, 0.0) @ w2 + b2
    assert out.shape == (B, OUT_F)
    assert jnp.allclose(out, ref, atol=1e-5, rtol=1e-5)

    print("KERNEL_OK")
</pallas_src>

<mosaic_0001>
module attributes {stable_mosaic.version = 11 : i64} {
  func.func @mlp_kernel(%arg0: i32, %arg1: memref<16x96xf32, #tpu.memory_space<vmem>>, %arg2: memref<96x40xf32, #tpu.memory_space<vmem>>, %arg3: memref<1x40xf32, #tpu.memory_space<vmem>>, %arg4: memref<40x2xf32, #tpu.memory_space<vmem>>, %arg5: memref<1x2xf32, #tpu.memory_space<vmem>>, %arg6: memref<16x2xf32, #tpu.memory_space<vmem>>) attributes {dimension_semantics = [#tpu.dimension_semantics<parallel>], iteration_bounds = array<i64: 1>, scalar_prefetch = 0 : i64, scratch_operands = 0 : i64, tpu.core_type = #tpu.core_type<tc>, window_params = [{transform_indices = @transform_0, window_bounds = array<i64: 16, 96>}, {pipeline_mode = #tpu.pipeline_mode<synchronous>, transform_indices = @transform_1, window_bounds = array<i64: 96, 40>}, {pipeline_mode = #tpu.pipeline_mode<synchronous>, transform_indices = @transform_2, window_bounds = array<i64: 1, 40>}, {pipeline_mode = #tpu.pipeline_mode<synchronous>, transform_indices = @transform_3, window_bounds = array<i64: 40, 2>}, {pipeline_mode = #tpu.pipeline_mode<synchronous>, transform_indices = @transform_4, window_bounds = array<i64: 1, 2>}, {transform_indices = @transform_5, window_bounds = array<i64: 16, 2>}]} {
    %c0 = arith.constant 0 : index
    %c0_0 = arith.constant 0 : index
    %0 = vector.load %arg1[%c0, %c0_0] : memref<16x96xf32, #tpu.memory_space<vmem>>, vector<16x96xf32>
    %c0_1 = arith.constant 0 : index
    %c0_2 = arith.constant 0 : index
    %1 = vector.load %arg2[%c0_1, %c0_2] : memref<96x40xf32, #tpu.memory_space<vmem>>, vector<96x40xf32>
    %cst = arith.constant dense<0.000000e+00> : vector<16x40xf32>
    %2 = tpu.matmul %0, %1, %cst {dimension_numbers = #tpu.dot_dimension_numbers<[1], [0], [0], [1], [0, 0, 1, 1], [], []>} : vector<16x96xf32>, vector<96x40xf32>, vector<16x40xf32> -> vector<16x40xf32>
    %c0_3 = arith.constant 0 : index
    %c0_4 = arith.constant 0 : index
    %3 = vector.load %arg3[%c0_3, %c0_4] : memref<1x40xf32, #tpu.memory_space<vmem>>, vector<1x40xf32>
    %4 = vector.broadcast %3 : vector<1x40xf32> to vector<16x40xf32>
    %5 = arith.addf %2, %4 : vector<16x40xf32>
    %cst_5 = arith.constant 0.000000e+00 : f32
    %6 = vector.broadcast %cst_5 : f32 to vector<16x40xf32>
    %7 = arith.maximumf %5, %6 : vector<16x40xf32>
    %c0_6 = arith.constant 0 : index
    %c0_7 = arith.constant 0 : index
    %8 = vector.load %arg4[%c0_6, %c0_7] : memref<40x2xf32, #tpu.memory_space<vmem>>, vector<40x2xf32>
    %cst_8 = arith.constant dense<0.000000e+00> : vector<16x2xf32>
    %9 = tpu.matmul %7, %8, %cst_8 {dimension_numbers = #tpu.dot_dimension_numbers<[1], [0], [0], [1], [0, 0, 1, 1], [], []>} : vector<16x40xf32>, vector<40x2xf32>, vector<16x2xf32> -> vector<16x2xf32>
    %c0_9 = arith.constant 0 : index
    %c0_10 = arith.constant 0 : index
    %10 = vector.load %arg5[%c0_9, %c0_10] : memref<1x2xf32, #tpu.memory_space<vmem>>, vector<1x2xf32>
    %11 = vector.broadcast %10 : vector<1x2xf32> to vector<16x2xf32>
    %12 = arith.addf %9, %11 : vector<16x2xf32>
    %c0_11 = arith.constant 0 : index
    %c0_12 = arith.constant 0 : index
    %13 = vector.load %arg6[%c0_11, %c0_12] : memref<16x2xf32, #tpu.memory_space<vmem>>, vector<16x2xf32>
    tpu.vector_store %arg6[%c0_11, %c0_12], %12 {strides = array<i32>} : memref<16x2xf32, #tpu.memory_space<vmem>>, vector<16x2xf32>,
    return
  }
  func.func @transform_0(%arg0: i32) -> (i32, i32) {
    %c0_i32 = arith.constant 0 : i32
    %c0_i32_0 = arith.constant 0 : i32
    return %arg0, %c0_i32 : i32, i32
  }
  func.func @transform_1(%arg0: i32) -> (i32, i32) {
    %c0_i32 = arith.constant 0 : i32
    %c0_i32_0 = arith.constant 0 : i32
    %c0_i32_1 = arith.constant 0 : i32
    return %c0_i32, %c0_i32_0 : i32, i32
  }
  func.func @transform_2(%arg0: i32) -> (i32, i32) {
    %c0_i32 = arith.constant 0 : i32
    %c0_i32_0 = arith.constant 0 : i32
    %c0_i32_1 = arith.constant 0 : i32
    return %c0_i32, %c0_i32_0 : i32, i32
  }
  func.func @transform_3(%arg0: i32) -> (i32, i32) {
    %c0_i32 = arith.constant 0 : i32
    %c0_i32_0 = arith.constant 0 : i32
    %c0_i32_1 = arith.constant 0 : i32
    return %c0_i32, %c0_i32_0 : i32, i32
  }
  func.func @transform_4(%arg0: i32) -> (i32, i32) {
    %c0_i32 = arith.constant 0 : i32
    %c0_i32_0 = arith.constant 0 : i32
    %c0_i32_1 = arith.constant 0 : i32
    return %c0_i32, %c0_i32_0 : i32, i32
  }
  func.func @transform_5(%arg0: i32) -> (i32, i32) {
    %c0_i32 = arith.constant 0 : i32
    %c0_i32_0 = arith.constant 0 : i32
    return %arg0, %c0_i32 : i32, i32
  }
}

</mosaic_0001>

<bundles_post_ra>
// kernel: tpu_custom_call.1
= control target key start
LH: loop header
LB: loop body
LE: loop exit
PB: predicated region body
PF: predicated region fallthrough
CT: control target
= control target key end

     0   :  { %vm41_vm0 = vcmask 785408   ;;  %vm137_vm1 = vcmask 326656   ;;  %vm219_vm2 = vcmask 15360   ;;  %s426_s1 = inlined_call_operand.vmem [shape: f32[96,40], index: 1, kind: input, shape index: {}]   ;;  %s427_s0 = inlined_call_operand.vmem [shape: f32[16,96], index: 0, kind: input, shape index: {}]   ;;  %s428_s3 = inlined_call_operand.vmem [shape: f32[40,2], index: 3, kind: input, shape index: {}]   ;;  %s429_s2 = inlined_call_operand.vmem [shape: f32[1,40], index: 2, kind: input, shape index: {}]   ;;  %s430_s4 = inlined_call_operand.vmem [shape: f32[1,2], index: 4, kind: input, shape index: {}]   ;;  %s431_s5 = inlined_call_operand.vmem [shape: f32[16,2], index: 5, kind: output, shape index: {}]  }
   0x1   :  { %v22_v0 = vld [vmem:[%s426_s1] sm:$0xff]  ;;  %v23_v1 = vld [vmem:[%s426_s1 + $0x8] sm:$0xff]  ;;  %v24_v2 = vld [vmem:[%s426_s1 + $0x10] sm:$0xff] }
   0x2   :  { %v293_v3 = vpack.c.bf16 %v23_v1, %v22_v0  ;;  %v25_v4 = vld [vmem:[%s426_s1 + $0x18] sm:$0xff]  ;;  %v26_v6 = vld [vmem:[%s426_s1 + $0x20] sm:$0xff]  ;;  %v27_v7 = vld [vmem:[%s426_s1 + $0x28] sm:$0xff] }
   0x3   :  { %v297_v5 = vpack.c.bf16 %v25_v4, %v24_v2  ;;  %v20_v8 = vld [vmem:[%s427_s0] sm:$0xff]  ;;  %v301_v10 = vpack.c.bf16 %v27_v7, %v26_v6  ;;  %v126_v11 = vld [vmem:[%s428_s3 + $0x8] sm:$0xff]  ;;  %v28_v12 = vld [vmem:[%s426_s1 + $0x30] sm:$0xff] }
   0x4   :  { %294 = vmatprep.subr.bf16.mxu0 %v293_v3  ;;  %v125_v9 = vld [vmem:[%s428_s3] sm:$0xff]  ;;  %277 = vmatprep.mubr.msk.f32.mxu0 %vm41_vm0, %v20_v8  ;;  %v29_v13 = vld [vmem:[%s426_s1 + $0x38] sm:$0xff]  ;;  %v31_v17 = vld [vmem:[%s426_s1 + $0x48] sm:$0xff] }
   0x5   :  { %296 = vmatpush3.bf16.msra.mxu0 %v293_v3  ;;  %v317_v14 = vpack.c.bf16 %v126_v11, %v125_v9  ;;  %v305_v15 = vpack.c.bf16 %v29_v13, %v28_v12  ;;  %v30_v16 = vld [vmem:[%s426_s1 + $0x40] sm:$0xff]  ;;  %v32_v19 = vld [vmem:[%s426_s1 + $0x50] sm:$0xff]  ;;  %v33_v20 = vld [vmem:[%s426_s1 + $0x58] sm:$0xff] }
   0x6   :  { %298 = vmatprep.subr.bf16.mxu0 %v297_v5  ;;  %v309_v18 = vpack.c.bf16 %v31_v17, %v30_v16  ;;  %v313_v21 = vpack.c.bf16 %v33_v20, %v32_v19  ;;  %v21_v22 = vld [vmem:[%s427_s0 + $0x8] sm:$0xff]  ;;  %v127_v23 = vld [vmem:[%s428_s3 + $0x10] sm:$0xff]  ;;  %v128_v24 = vld [vmem:[%s428_s3 + $0x18] sm:$0xff] }
   0x7   :  { %318 = vmatprep.subr.bf16.mxu1 %v317_v14  ;;  %v321_v25 = vpack.c.bf16 %v128_v24, %v127_v23  ;;  %v129_v26 = vld [vmem:[%s428_s3 + $0x20] sm:$0xff] }
   0x8   :  { %320 = vmatpush3.bf16.msra.mxu1 %v317_v14  ;;  %v226_v27 = vld [vmem:[%s429_s2] ss:$0 sm:$0xff] }
   0x9   :  { %300 = vmatpush3.bf16.msra.mxu0 %v297_v5  ;;  %322 = vmatprep.subr.bf16.mxu1 %v321_v25  ;;  %v229_v34 = vld [vmem:[%s430_s4] ss:$0 sm:$0xff] }
   0xa   :  { %302 = vmatprep.subr.bf16.mxu0 %v301_v10 }
   0xc   :  { %324 = vmatpush3.bf16.msra.mxu1 %v321_v25 }
   0xd   :  { %304 = vmatpush3.bf16.msra.mxu0 %v301_v10  ;;  %288 = vmatprep.subr.mxu1 %v129_v26 }
   0xe   :  { %306 = vmatprep.subr.bf16.mxu0 %v305_v15 }
  0x10   :  { %289 = vmatpush3.msra.mxu1 %v129_v26 }
  0x11   :  { %308 = vmatpush3.bf16.msra.mxu0 %v305_v15 }
  0x12   :  { %310 = vmatprep.subr.bf16.mxu0 %v309_v18 }
  0x15   :  { %312 = vmatpush3.bf16.msra.mxu0 %v309_v18 }
  0x16   :  { %314 = vmatprep.subr.bf16.mxu0 %v313_v21 }
  0x19   :  { %316 = vmatpush3.bf16.msra.mxu0 %v313_v21 }
  0x1c   :  { %278 = vmatmul.mubr.msk.f32.vlgmr.msra.gmra.mrb[0].mxu0 %vm41_vm0, %v21_v22 }
  0xef   :  { %v279_v28 = vpop.f32.mrb[0].mxu0 }
  0xf0   :  { %v120_v29 = vadd.f32 %v279_v28, %v226_v27  ;;  %v114_v30 = vpop.f32.mrb[1].mxu0 }
  0xf1   :  { %v115_v31 = vadd.f32 %v226_v27, %v114_v30 }
  0xf2   :  { %v124_v33 = vmax.f32 %v120_v29, 0.0 }
  0xf3   :  { %v123_v32 = vmax.f32 %v115_v31, 0.0 }
  0xf5   :  { %290 = vmatprep.mubr.msk.f32.mxu1 %vm137_vm1, %v123_v32 }
  0xf6   :  { %291 = vmatmul.mubr.msk.f32.vlgmr.msra.gmra.mrb[0].mxu1 %vm137_vm1, %v124_v33 }
 0x1c9   :  { %v292_v35 = vpop.f32.mrb[0].mxu1 }
 0x1ca   :  { %v216_v36 = vadd.f32 %v292_v35, %v229_v34  ;;  %v210_v37 = vpop.f32.mrb[1].mxu1 }
 0x1cb   :  { %v211_v38 = vadd.f32 %v229_v34, %v210_v37 }
 0x1cc   :  { %221 = vst.msk [vmem:[%s431_s5 + $0x8] sm:$0xff] %vm219_vm2, %v216_v36 }
 0x1cd   :  { %220 = vst.msk [vmem:[%s431_s5] sm:$0xff] %vm219_vm2, %v211_v38 }

</bundles_post_ra>
